<compile_context>
chip_gen: v7x
topology: tpu7x:2x2x1
jax: 0.10.0
libtpu: 0.0.40
codegen_flags: <defaults>
</compile_context>

<pallas_src>
import math
import random
from functools import reduce

import numpy as np
import jax
import jax.numpy as jnp
from jax.experimental import pallas as pl
from jax.experimental.pallas import tpu as pltpu

NUM_OPS = 4  # Brightness, Contrast-scale, Invert, Identity
_LANE_CANDIDATES = (2048, 1024, 512, 256, 128)
_TARGET_BLOCK_BYTES = 2 << 20  # ~2 MiB f32 per block (safe on v5e/v6e/v7x)


# --------------------------------------------------------------------------- #
# Static layout planning (pure Python, runs at trace time).
# --------------------------------------------------------------------------- #
def _divisors(n):
    return [d for d in range(1, n + 1) if n % d == 0]


def _chunk_sizes(bsz, num_chunks):
    """torch.Tensor.chunk semantics along dim 0 (sizes only)."""
    if num_chunks <= 1:
        return [bsz]
    cs = -(-bsz // num_chunks)  # ceil
    sizes, i = [], 0
    while i < bsz:
        sizes.append(min(cs, bsz - i))
        i += cs
    return sizes


def _plan_layout(bsz, per_sample, num_chunks):
    """Pick lane width, per-sample pad, rows/sample, tile rows and the
    per-tile chunk-id table so every tile lies wholly inside one chunk."""
    n_list = _chunk_sizes(bsz, num_chunks)

    lanes, pad = None, 0
    for cand in _LANE_CANDIDATES:
        if per_sample % (8 * cand) == 0:
            lanes = cand
            break
    if lanes is None:  # rare fallback: pad each sample to a (8,128) multiple
        lanes = 128
        pad = (-per_sample) % (8 * lanes)
    per_sample_p = per_sample + pad
    rps = per_sample_p // lanes  # rows per sample, always a multiple of 8

    target_rows = max(8, _TARGET_BLOCK_BYTES // (lanes * 4))
    gcd_n = reduce(math.gcd, n_list)

    if rps <= target_rows:
        ks = [k for k in _divisors(gcd_n) if k * rps <= target_rows]
        if bsz >= 2:
            # keep >=2 grid steps so v7x megacore can use both TensorCores
            ks = [k for k in ks if bsz // k >= 2] or [1]
        k = max(ks) if ks else 1
        tr = k * rps
        if bsz == 1 and rps >= 16:
            halves = [d for d in _divisors(rps) if d % 8 == 0 and d <= rps // 2]
            if halves:
                tr = max(halves)
    else:
        # split within a sample; tr must divide rps and stay a multiple of 8
        divs = [d for d in _divisors(rps) if d % 8 == 0 and d <= target_rows]
        tr = max(divs) if divs else 8

    tile_chunk = []
    for c, n in enumerate(n_list):
        tile_chunk.extend([c] * ((n * rps) // tr))
    return n_list, lanes, pad, per_sample_p, rps, tr, tile_chunk


# --------------------------------------------------------------------------- #
# Pallas kernel: all stages of the selected sub-policy, fused per tile.
# --------------------------------------------------------------------------- #
def _policy_kernel_factory(num_stages):
    def kernel(tile_chunk_ref, coeffs_ref, x_ref, o_ref):
        # tile_chunk_ref: SMEM i32[num_tiles]   -> chunk id of this tile
        # coeffs_ref:     SMEM f32[num_chunks * num_stages * 6]
        #                 layout: [(c*num_stages + s)*6 + {A,B,c0,c1,s1,m0}]
        # x_ref / o_ref:  VMEM f32[tr, lanes]
        c = tile_chunk_ref[pl.program_id(0)]
        x = x_ref[...]
        for s in range(num_stages):  # static unroll: all stages in-register
            base = (c * num_stages + s) * 6
            a = coeffs_ref[base + 0]
            b_ = coeffs_ref[base + 1]
            c0 = coeffs_ref[base + 2]
            c1 = coeffs_ref[base + 3]
            s1 = coeffs_ref[base + 4]
            m0 = coeffs_ref[base + 5]
            f0 = jnp.clip(x + m0, 0.0, 1.0)   # relaxed Brightness
            f1 = jnp.clip(x * s1, 0.0, 1.0)   # relaxed Contrast-like scale
            x = a + b_ * x + c0 * f0 + c1 * f1
        o_ref[...] = x

    return kernel


def _fold_coeffs(raw_w, probs, mags, temperature):
    """Vectorized fold of softmax weights / probs / mags into the 6 kernel
    coefficients.  Input shapes [..., NUM_OPS], output [..., 6]."""
    w = jax.nn.softmax(raw_w.astype(jnp.float32) / temperature, axis=-1)
    p = probs.astype(jnp.float32)
    m = mags.astype(jnp.float32)
    a = w[..., 2] * p[..., 2]                                  # Invert const
    b_ = (jnp.sum(w * (1.0 - p), axis=-1)
          + w[..., 3] * p[..., 3] - w[..., 2] * p[..., 2])     # linear in x
    c0 = w[..., 0] * p[..., 0]                                 # Brightness
    c1 = w[..., 1] * p[..., 1]                                 # Contrast
    s1 = 1.0 + m[..., 1]
    m0 = m[..., 0]
    return jnp.stack([a, b_, c0, c1, s1, m0], axis=-1)


# --------------------------------------------------------------------------- #
# Policy wrapper.
# --------------------------------------------------------------------------- #
class PallasPolicy:
    """JAX/Pallas counterpart of the PyTorch `Policy` (training-mode forward)."""

    def __init__(self, key, num_sub_policies, temperature=0.05,
                 operation_count=2, num_chunks=4):
        self.num_sub_policies = num_sub_policies
        self.temperature = float(temperature)
        self.operation_count = operation_count
        self.num_chunks = num_chunks
        # init_parameters(): every learnable parameter ~ U(0, 1).
        kw, kp, km = jax.random.split(key, 3)
        shape = (num_sub_policies, operation_count, NUM_OPS)
        self.raw_w = jax.random.uniform(kw, shape, dtype=jnp.float32)
        self.probs = jax.random.uniform(kp, shape, dtype=jnp.float32)
        self.mags = jax.random.uniform(km, shape, dtype=jnp.float32)
        self._forward = jax.jit(self._forward_impl)

    def _forward_impl(self, x, idxs):
        orig_shape = x.shape
        orig_dtype = x.dtype
        bsz = orig_shape[0]
        per_sample = int(np.prod(orig_shape[1:]))
        (_, lanes, pad, per_sample_p, rps, tr,
         tile_chunk) = _plan_layout(bsz, per_sample, self.num_chunks)
        num_tiles = len(tile_chunk)
        total_rows = bsz * rps

        # Per-chunk, per-stage folded coefficients -> flat SMEM table.
        raw_sel = jnp.take(self.raw_w, idxs, axis=0)   # [nc, OC, NUM_OPS]
        p_sel = jnp.take(self.probs, idxs, axis=0)
        m_sel = jnp.take(self.mags, idxs, axis=0)
        coeffs = _fold_coeffs(raw_sel, p_sel, m_sel, self.temperature)
        coeffs_flat = coeffs.reshape(-1).astype(jnp.float32)

        # Lane-dense f32 slab (no pad in the common NCHW case).
        x2 = x.reshape(bsz, per_sample).astype(jnp.float32)
        if pad:
            x2 = jnp.pad(x2, ((0, 0), (0, pad)))
        x2d = x2.reshape(total_rows, lanes)

        tile_chunk_arr = jnp.asarray(tile_chunk, dtype=jnp.int32)
        kernel = _policy_kernel_factory(self.operation_count)

        out2d = pl.pallas_call(
            kernel,
            out_shape=jax.ShapeDtypeStruct((total_rows, lanes), jnp.float32),
            grid_spec=pltpu.PrefetchScalarGridSpec(
                num_scalar_prefetch=2,            # chunk-id table + coeffs
                grid=(num_tiles,),
                in_specs=[pl.BlockSpec((tr, lanes), lambda i, tc, cf: (i, 0))],
                out_specs=pl.BlockSpec((tr, lanes), lambda i, tc, cf: (i, 0)),
            ),
            compiler_params=pltpu.CompilerParams(
                dimension_semantics=("parallel",)),
        )(tile_chunk_arr, coeffs_flat, x2d)

        out = out2d.reshape(bsz, per_sample_p)
        if pad:
            out = out[:, :per_sample]
        return out.reshape(orig_shape).astype(orig_dtype)

    def __call__(self, x, sub_policy_indices):
        expected = len(_chunk_sizes(x.shape[0], self.num_chunks))
        idxs = jnp.asarray(sub_policy_indices, dtype=jnp.int32)
        assert idxs.shape[0] == expected, (idxs.shape, expected)
        return self._forward(x, idxs)


# --------------------------------------------------------------------------- #
# Pure-JAX reference (mirrors the PyTorch training-mode math, un-fused).
# --------------------------------------------------------------------------- #
def _torch_chunk(x, num_chunks):
    n = x.shape[0]
    if num_chunks <= 1:
        return [x]
    cs = -(-n // num_chunks)
    return [x[i:i + cs] for i in range(0, n, cs)]


def _stage_reference(x, raw_w, probs, mags, temperature):
    w = jax.nn.softmax(raw_w / temperature)
    f = [
        jnp.clip(x + mags[0], 0.0, 1.0),          # Brightness
        jnp.clip(x * (1.0 + mags[1]), 0.0, 1.0),  # Contrast-like scale
        1.0 - x,                                  # Invert
        x,                                        # Identity
    ]
    ops = jnp.stack([probs[k] * f[k] + (1.0 - probs[k]) * x
                     for k in range(NUM_OPS)])
    return (ops * w.reshape((-1,) + (1,) * x.ndim)).sum(0)


def _policy_reference(x, policy, sub_policy_indices):
    chunks = _torch_chunk(x, policy.num_chunks)
    outs = []
    for chunk, idx in zip(chunks, sub_policy_indices):
        cur = chunk.astype(jnp.float32)
        for s in range(policy.operation_count):
            cur = _stage_reference(cur, policy.raw_w[idx, s],
                                   policy.probs[idx, s], policy.mags[idx, s],
                                   policy.temperature)
        outs.append(cur)
    return outs[0] if len(outs) == 1 else jnp.concatenate(outs, axis=0)


# --------------------------------------------------------------------------- #
if __name__ == "__main__":
    key = jax.random.PRNGKey(0)
    k_x, k_params = jax.random.split(key)

    B, C, H, W = 2, 4, 16, 16
    num_sub_policies, operation_count, num_chunks = 3, 2, 2
    temperature = 0.05

    x = jax.random.uniform(k_x, (B, C, H, W), dtype=jnp.float32)
    policy = PallasPolicy(k_params, num_sub_policies, temperature,
                          operation_count, num_chunks)

    # Policy._forward picks a random sub-policy per chunk via Python random.
    rng = random.Random(0)
    n_chunks = len(_chunk_sizes(B, num_chunks))
    idxs = [rng.randrange(num_sub_policies) for _ in range(n_chunks)]

    out = policy(x, idxs)
    out = jax.block_until_ready(out)

    ref = _policy_reference(x, policy, idxs)
    assert out.shape == (B, C, H, W)
    max_err = float(jnp.max(jnp.abs(out - ref)))
    assert jnp.allclose(out, ref, atol=1e-5, rtol=1e-5), max_err

    print("KERNEL_OK")
</pallas_src>

<mosaic_0001>
module attributes {stable_mosaic.version = 11 : i64} {
  func.func @kernel(%arg0: i32, %arg1: memref<2xi32, #tpu.memory_space<smem>>, %arg2: memref<24xf32, #tpu.memory_space<smem>>, %arg3: memref<8x128xf32, #tpu.memory_space<vmem>>, %arg4: memref<8x128xf32, #tpu.memory_space<vmem>>) attributes {dimension_semantics = [#tpu.dimension_semantics<parallel>], iteration_bounds = array<i64: 2>, scalar_prefetch = 2 : i64, scratch_operands = 0 : i64, tpu.core_type = #tpu.core_type<tc>, window_params = [{transform_indices = @transform_0, window_bounds = array<i64: 8, 128>}, {transform_indices = @transform_1, window_bounds = array<i64: 8, 128>}]} {
    %0 = arith.index_cast %arg0 : i32 to index
    %1 = memref.load %arg1[%0] : memref<2xi32, #tpu.memory_space<smem>>
    %c0 = arith.constant 0 : index
    %c0_0 = arith.constant 0 : index
    %2 = vector.load %arg3[%c0, %c0_0] : memref<8x128xf32, #tpu.memory_space<vmem>>, vector<8x128xf32>
    %c2_i32 = arith.constant 2 : i32
    %3 = arith.muli %1, %c2_i32 : i32
    %c0_i32 = arith.constant 0 : i32
    %4 = arith.addi %3, %c0_i32 : i32
    %c6_i32 = arith.constant 6 : i32
    %5 = arith.muli %4, %c6_i32 : i32
    %c0_i32_1 = arith.constant 0 : i32
    %6 = arith.addi %5, %c0_i32_1 : i32
    %7 = arith.index_cast %6 : i32 to index
    %8 = memref.load %arg2[%7] : memref<24xf32, #tpu.memory_space<smem>>
    %c1_i32 = arith.constant 1 : i32
    %9 = arith.addi %5, %c1_i32 : i32
    %10 = arith.index_cast %9 : i32 to index
    %11 = memref.load %arg2[%10] : memref<24xf32, #tpu.memory_space<smem>>
    %c2_i32_2 = arith.constant 2 : i32
    %12 = arith.addi %5, %c2_i32_2 : i32
    %13 = arith.index_cast %12 : i32 to index
    %14 = memref.load %arg2[%13] : memref<24xf32, #tpu.memory_space<smem>>
    %c3_i32 = arith.constant 3 : i32
    %15 = arith.addi %5, %c3_i32 : i32
    %16 = arith.index_cast %15 : i32 to index
    %17 = memref.load %arg2[%16] : memref<24xf32, #tpu.memory_space<smem>>
    %c4_i32 = arith.constant 4 : i32
    %18 = arith.addi %5, %c4_i32 : i32
    %19 = arith.index_cast %18 : i32 to index
    %20 = memref.load %arg2[%19] : memref<24xf32, #tpu.memory_space<smem>>
    %c5_i32 = arith.constant 5 : i32
    %21 = arith.addi %5, %c5_i32 : i32
    %22 = arith.index_cast %21 : i32 to index
    %23 = memref.load %arg2[%22] : memref<24xf32, #tpu.memory_space<smem>>
    %24 = vector.broadcast %23 : f32 to vector<8x128xf32>
    %25 = arith.addf %2, %24 : vector<8x128xf32>
    %cst = arith.constant 0.000000e+00 : f32
    %cst_3 = arith.constant 1.000000e+00 : f32
    %26 = vector.broadcast %cst : f32 to vector<8x128xf32>
    %27 = arith.maximumf %26, %25 : vector<8x128xf32>
    %28 = vector.broadcast %cst_3 : f32 to vector<8x128xf32>
    %29 = arith.minimumf %28, %27 : vector<8x128xf32>
    %30 = vector.broadcast %20 : f32 to vector<8x128xf32>
    %31 = arith.mulf %2, %30 : vector<8x128xf32>
    %cst_4 = arith.constant 0.000000e+00 : f32
    %cst_5 = arith.constant 1.000000e+00 : f32
    %32 = vector.broadcast %cst_4 : f32 to vector<8x128xf32>
    %33 = arith.maximumf %32, %31 : vector<8x128xf32>
    %34 = vector.broadcast %cst_5 : f32 to vector<8x128xf32>
    %35 = arith.minimumf %34, %33 : vector<8x128xf32>
    %36 = vector.broadcast %11 : f32 to vector<8x128xf32>
    %37 = arith.mulf %36, %2 : vector<8x128xf32>
    %38 = vector.broadcast %8 : f32 to vector<8x128xf32>
    %39 = arith.addf %38, %37 : vector<8x128xf32>
    %40 = vector.broadcast %14 : f32 to vector<8x128xf32>
    %41 = arith.mulf %40, %29 : vector<8x128xf32>
    %42 = arith.addf %39, %41 : vector<8x128xf32>
    %43 = vector.broadcast %17 : f32 to vector<8x128xf32>
    %44 = arith.mulf %43, %35 : vector<8x128xf32>
    %45 = arith.addf %42, %44 : vector<8x128xf32>
    %c2_i32_6 = arith.constant 2 : i32
    %46 = arith.muli %1, %c2_i32_6 : i32
    %c1_i32_7 = arith.constant 1 : i32
    %47 = arith.addi %46, %c1_i32_7 : i32
    %c6_i32_8 = arith.constant 6 : i32
    %48 = arith.muli %47, %c6_i32_8 : i32
    %c0_i32_9 = arith.constant 0 : i32
    %49 = arith.addi %48, %c0_i32_9 : i32
    %50 = arith.index_cast %49 : i32 to index
    %51 = memref.load %arg2[%50] : memref<24xf32, #tpu.memory_space<smem>>
    %c1_i32_10 = arith.constant 1 : i32
    %52 = arith.addi %48, %c1_i32_10 : i32
    %53 = arith.index_cast %52 : i32 to index
    %54 = memref.load %arg2[%53] : memref<24xf32, #tpu.memory_space<smem>>
    %c2_i32_11 = arith.constant 2 : i32
    %55 = arith.addi %48, %c2_i32_11 : i32
    %56 = arith.index_cast %55 : i32 to index
    %57 = memref.load %arg2[%56] : memref<24xf32, #tpu.memory_space<smem>>
    %c3_i32_12 = arith.constant 3 : i32
    %58 = arith.addi %48, %c3_i32_12 : i32
    %59 = arith.index_cast %58 : i32 to index
    %60 = memref.load %arg2[%59] : memref<24xf32, #tpu.memory_space<smem>>
    %c4_i32_13 = arith.constant 4 : i32
    %61 = arith.addi %48, %c4_i32_13 : i32
    %62 = arith.index_cast %61 : i32 to index
    %63 = memref.load %arg2[%62] : memref<24xf32, #tpu.memory_space<smem>>
    %c5_i32_14 = arith.constant 5 : i32
    %64 = arith.addi %48, %c5_i32_14 : i32
    %65 = arith.index_cast %64 : i32 to index
    %66 = memref.load %arg2[%65] : memref<24xf32, #tpu.memory_space<smem>>
    %67 = vector.broadcast %66 : f32 to vector<8x128xf32>
    %68 = arith.addf %45, %67 : vector<8x128xf32>
    %cst_15 = arith.constant 0.000000e+00 : f32
    %cst_16 = arith.constant 1.000000e+00 : f32
    %69 = vector.broadcast %cst_15 : f32 to vector<8x128xf32>
    %70 = arith.maximumf %69, %68 : vector<8x128xf32>
    %71 = vector.broadcast %cst_16 : f32 to vector<8x128xf32>
    %72 = arith.minimumf %71, %70 : vector<8x128xf32>
    %73 = vector.broadcast %63 : f32 to vector<8x128xf32>
    %74 = arith.mulf %45, %73 : vector<8x128xf32>
    %cst_17 = arith.constant 0.000000e+00 : f32
    %cst_18 = arith.constant 1.000000e+00 : f32
    %75 = vector.broadcast %cst_17 : f32 to vector<8x128xf32>
    %76 = arith.maximumf %75, %74 : vector<8x128xf32>
    %77 = vector.broadcast %cst_18 : f32 to vector<8x128xf32>
    %78 = arith.minimumf %77, %76 : vector<8x128xf32>
    %79 = vector.broadcast %54 : f32 to vector<8x128xf32>
    %80 = arith.mulf %79, %45 : vector<8x128xf32>
    %81 = vector.broadcast %51 : f32 to vector<8x128xf32>
    %82 = arith.addf %81, %80 : vector<8x128xf32>
    %83 = vector.broadcast %57 : f32 to vector<8x128xf32>
    %84 = arith.mulf %83, %72 : vector<8x128xf32>
    %85 = arith.addf %82, %84 : vector<8x128xf32>
    %86 = vector.broadcast %60 : f32 to vector<8x128xf32>
    %87 = arith.mulf %86, %78 : vector<8x128xf32>
    %88 = arith.addf %85, %87 : vector<8x128xf32>
    %c0_19 = arith.constant 0 : index
    %c0_20 = arith.constant 0 : index
    %89 = vector.load %arg4[%c0_19, %c0_20] : memref<8x128xf32, #tpu.memory_space<vmem>>, vector<8x128xf32>
    tpu.vector_store %arg4[%c0_19, %c0_20], %88 {strides = array<i32>} : memref<8x128xf32, #tpu.memory_space<vmem>>, vector<8x128xf32>,
    return
  }
  func.func @transform_0(%arg0: i32, %arg1: memref<2xi32, #tpu.memory_space<smem>>, %arg2: memref<24xf32, #tpu.memory_space<smem>>) -> (i32, i32) {
    %c0_i32 = arith.constant 0 : i32
    %c0_i32_0 = arith.constant 0 : i32
    return %arg0, %c0_i32 : i32, i32
  }
  func.func @transform_1(%arg0: i32, %arg1: memref<2xi32, #tpu.memory_space<smem>>, %arg2: memref<24xf32, #tpu.memory_space<smem>>) -> (i32, i32) {
    %c0_i32 = arith.constant 0 : i32
    %c0_i32_0 = arith.constant 0 : i32
    return %arg0, %c0_i32 : i32, i32
  }
}

</mosaic_0001>

<bundles_post_ra>
// kernel: _forward_impl.1
= control target key start
LH: loop header
LB: loop body
LE: loop exit
PB: predicated region body
PF: predicated region fallthrough
CT: control target
= control target key end

     0   :  { %s348_s0 = inlined_call_operand.vmem [shape: s32[2], index: 0, kind: input, shape index: {}]   ;;  %s349_s2 = inlined_call_operand.vmem [shape: f32[16,128], index: 2, kind: input, shape index: {}]   ;;  %s350_s3 = inlined_call_operand.vmem [shape: f32[16,128], index: 3, kind: output, shape index: {}]   ;;  %s351_s1 = inlined_call_operand.vmem [shape: f32[24], index: 1, kind: input, shape index: {}]  }
   0x1   :  { %s8_s14 = sshll.u32 %s348_s0, 4  ;;  %s12_s17 = sshll.u32 %s351_s1, 4  ;;  %s9_s14 = int_to_ptr.vmem [resolvable:$true] %s8_s14  ;;  %s13_s17 = int_to_ptr.vmem [resolvable:$true] %s12_s17 }
   0x2   :  { %s262_s18 = scalar_lea.vmem %s9_s14, 16  ;;  %p267_p1 = scmp.lt.s32.totalorder %s9_s14, %s9_s14 }
   0x3   :  { %p263_p0 = scmp.ne.s32.totalorder %s9_s14, %s262_s18  ;;  %p268_p2 = scmp.lt.s32.totalorder %s262_s18, %s262_s18 }
   0x5   :  { %p269_p3 = por %p268_p2, %p267_p1 }
   0x7   :  { %p270_p4 = pnand %p269_p3, %p263_p0 }
   0x9   :  { %273 = shalt.err (!%p270_p4)  }
   0xa   :  { %s296_s19 = smov [#allocation3]   ;;  %s274_s20 = scalar_lea.vmem %s13_s17, 16 }
   0xb   :  { %11 = dma.vmem_to_smem %s9_s14, 16, %s296_s19, [#allocation2] }
   0xc   :  { %p275_p5 = scmp.ne.s32.totalorder %s13_s17, %s274_s20  ;;  %p279_p6 = scmp.lt.s32.totalorder %s13_s17, %s13_s17 }
   0xd   :  { %p280_p7 = scmp.lt.s32.totalorder %s274_s20, %s274_s20 }
   0xf   :  { %p281_p8 = por %p280_p7, %p279_p6 }
  0x11   :  { %p282_p9 = pnand %p281_p8, %p275_p5 }
  0x13   :  { %285 = shalt.err (!%p282_p9)  }
  0x14   :  { %s297_s0 = smov [#allocation4]  }
  0x15   :  { %15 = dma.vmem_to_smem %s13_s17, 16, %s297_s0, [#allocation2] }
  0x16   :  { %290 = dma.done.wait [#allocation2], 32 }
  0x17   :  { %291 = vsyncadd [#allocation2], 4294967264 }
  0x18   :  { %17 = sfence }
  0x19   :  { %s324_s1 = smov 0  }
  0x1a LB: > { %s242_s21 = sadd.s32 4294967295, %s294_s1   ;;  %p246_p10 = scmp.ge.s32.totalorder %s294_s1, 1  ;;  %s294_s1 = sphi %s324_s1, %s23_s1  }
  0x1b   : > { %p98_p11 = scmp.lt.s32.totalorder %s294_s1, 3 }
  0x1d   : > { %p99_p12 = pnand %p246_p10, %p98_p11 }
  0x1e   : > { %s124_s22 = sld [smem:[#allocation3 + %s242_s21]] (!%p99_p12)  ;;  %p116_p13 = scmp.lt.s32.totalorder (!%p99_p12), %s242_s21, 1 }
  0x1f   : > { %102 = sbr.rel (%p99_p12) target bundleno = 76 (0x4c), region = 24 }
  0x24   : > { %s126_s23 = smul.u32 (!%p99_p12), 12, %s124_s22  ;;  %s249_s24 = sshll.u32 (!%p99_p12), %s124_s22, 1 }
  0x25   : > { %s157_s29 = sadd.s32 (!%p99_p12), 1, %s249_s24 }
  0x26   : > { %s353_s21 = smov (!%p116_p13, %s242_s21), 1  ;;  %s128_s25 = sadd.s32 1, %s126_s23 }
  0x27   : > { %s247_s26 = sshll.u32 %s353_s21, 3  ;;  %s129_s27 = sld [smem:[#allocation4 + %s128_s25]] }
  0x28   : > { %s130_s28 = sadd.s32 2, %s126_s23  ;;  %s132_s30 = sadd.s32 3, %s126_s23 }
  0x29   : > { %s134_s4 = sadd.s32 4, %s126_s23  ;;  %s136_s6 = sadd.s32 5, %s126_s23 }
  0x2a   : > { %s135_s5 = sld [smem:[#allocation4 + %s134_s4]]  ;;  %s119_s11 = scalar_lea.vmem %s349_s2, %s247_s26 }
  0x2b   : > { %s127_s7 = sld [smem:[#allocation4 + %s126_s23]]  ;;  %s158_s14 = smul.u32 6, %s157_s29  ;;  %v125_v0 = vld [vmem:[%s119_s11] sm:$0xff] }
  0x2c   : > { %s137_s8 = sld [smem:[#allocation4 + %s136_s6]]  ;;  %s123_s29 = scalar_lea.vmem %s350_s3, %s247_s26 }
  0x2d   : > { %s131_s12 = sld [smem:[#allocation4 + %s130_s28]]  ;;  %v146_v1 = vstv %s129_s27  ;;  %s160_s15 = sadd.s32 1, %s158_s14 }
  0x2e   : > { %s133_s13 = sld [smem:[#allocation4 + %s132_s30]]  ;;  %s166_s16 = sadd.s32 4, %s158_s14  ;;  %v147_v6 = vmul.f32 %v146_v1, %v125_v0 }
  0x2f   : > { %s168_s17 = sadd.s32 5, %s158_s14  ;;  %s161_s18 = sld [smem:[#allocation4 + %s160_s15]] }
  0x30   : > { %v142_v2 = vstv %s135_s5  ;;  %s167_s19 = sld [smem:[#allocation4 + %s166_s16]]  ;;  %s162_s0 = sadd.s32 2, %s158_s14 }
  0x31   : > { %v143_v4 = vmul.f32 %v142_v2, %v125_v0  ;;  %v148_v8 = vstv %s127_s7  ;;  %s169_s20 = sld [smem:[#allocation4 + %s168_s17]]  ;;  %s164_s22 = sadd.s32 3, %s158_s14 }
  0x32   : > { %v138_v3 = vstv %s137_s8  ;;  %v149_v14 = vadd.f32 %v148_v8, %v147_v6  ;;  %s159_s23 = sld [smem:[#allocation4 + %s158_s14]] }
  0x33   : > { %v139_v5 = vadd.f32 %v138_v3, %v125_v0  ;;  %v144_v7 = vmax.f32 %v143_v4, 0.0  ;;  %v150_v11 = vstv %s131_s12  ;;  %s163_s24 = sld [smem:[#allocation4 + %s162_s0]] }
  0x34   : > { %v153_v12 = vstv %s133_s13  ;;  %s165_s25 = sld [smem:[#allocation4 + %s164_s22]] }
  0x35   : > { %v140_v9 = vmax.f32 %v139_v5, 0.0  ;;  %v145_v10 = vmin.f32 %v144_v7, 1.0  ;;  %v178_v20 = vstv %s161_s18 }
  0x36   : > { %v174_v19 = vstv %s167_s19 }
  0x37   : > { %v141_v13 = vmin.f32 %v140_v9, 1.0  ;;  %v154_v16 = vmul.f32 %v153_v12, %v145_v10  ;;  %v170_v18 = vstv %s169_s20 }
  0x38   : > { %v180_v25 = vstv %s159_s23 }
  0x39   : > { %v151_v15 = vmul.f32 %v150_v11, %v141_v13  ;;  %v182_v28 = vstv %s163_s24 }
  0x3a   : > { %v185_v29 = vstv %s165_s25 }
  0x3b   : > { %v152_v17 = vadd.f32 %v151_v15, %v149_v14 }
  0x3d   : > { %v155_v21 = vadd.f32 %v154_v16, %v152_v17 }
  0x3f   : > { %v171_v22 = vadd.f32 %v170_v18, %v155_v21  ;;  %v175_v23 = vmul.f32 %v174_v19, %v155_v21  ;;  %v179_v24 = vmul.f32 %v178_v20, %v155_v21 }
  0x41   : > { %v172_v26 = vmax.f32 %v171_v22, 0.0  ;;  %v176_v27 = vmax.f32 %v175_v23, 0.0  ;;  %v181_v32 = vadd.f32 %v180_v25, %v179_v24 }
  0x43   : > { %v173_v30 = vmin.f32 %v172_v26, 1.0  ;;  %v177_v31 = vmin.f32 %v176_v27, 1.0 }
  0x45   : > { %v183_v33 = vmul.f32 %v182_v28, %v173_v30  ;;  %v186_v34 = vmul.f32 %v185_v29, %v177_v31 }
  0x47   : > { %v184_v35 = vadd.f32 %v183_v33, %v181_v32 }
  0x49   : > { %v187_v36 = vadd.f32 %v186_v34, %v184_v35 }
  0x4b   : > { %188 = vst [vmem:[%s123_s29] sm:$0xff] %v187_v36 }
  0x4c PF: > { %s23_s1 = sadd.s32 1, %s294_s1  }
  0x4d   : > { %p20_p0 = scmp.ge.s32.totalorder %s23_s1, 4  }
  0x4f   :  { %22 = sbr.rel (!%p20_p0) target bundleno = 26 (0x1a), region = 54 }

</bundles_post_ra>
